<compile_context>
chip_gen: v7x
topology: tpu7x:2x2x1
jax: 0.10.0
libtpu: 0.0.40
codegen_flags: <defaults>
</compile_context>

<pallas_src>
import jax
import jax.numpy as jnp
from jax import lax
from jax.experimental import pallas as pl
from jax.experimental.pallas import tpu as pltpu

EPS = 1e-5
_VMEM_LIMIT = 32 * 1024 * 1024  # explicit scoped-VMEM limit; blocks below use << this


def _choose_tile(L, cin, cout):
    """Lane-tile over L sized for ~4 MiB of (input + output) block bytes (f32)."""
    rows = cin + 2 * cout
    budget = 4 * 1024 * 1024
    tl = max(512, min(32768, (budget // (rows * 4)) // 128 * 128))
    if L <= tl:
        return L, L                      # single full-extent tile, no padding needed
    lp = -(-L // tl) * tl                # pad L up to a multiple of the tile
    return tl, lp


def _stats_kernel(x_ref, gram_ref, sx_ref):
    """Accumulate Gram = sum x x^T (Cin,Cin) and column-sum of x (Cin,1) over the grid."""
    @pl.when(jnp.logical_and(pl.program_id(0) == 0, pl.program_id(1) == 0))
    def _():
        gram_ref[...] = jnp.zeros_like(gram_ref)
        sx_ref[...] = jnp.zeros_like(sx_ref)

    x = x_ref[...]                                              # (Cin, TL)
    gram_ref[...] += lax.dot_general(
        x, x, dimension_numbers=(((1,), (1,)), ((), ())),
        preferred_element_type=jnp.float32)                     # x @ x.T on the MXU
    sx_ref[...] += jnp.sum(x, axis=1, keepdims=True)


def _up_kernel(x_ref, w_ref, scale_ref, shift_ref, y_ref):
    """One tile: fused matmul (both taps) + folded BN affine + fused leaky-ReLU."""
    # x_ref: (Cin, TL), w_ref: (2*Cout, Cin), scale/shift: (2*Cout, 1), y_ref: (2*Cout, TL)
    y = jnp.dot(w_ref[...], x_ref[...], preferred_element_type=jnp.float32)
    y = y * scale_ref[...] + shift_ref[...]
    # LeakyReLU(0.1) followed by leaky_relu(0.01) == single slope 0.001 on negatives.
    y_ref[...] = jnp.where(y >= 0.0, y, 0.001 * y).astype(y_ref.dtype)


def up_forward(x, weight, bias, gamma, beta):
    """x: (N, C_in, L) f32. weight: (C_in, C_out, 2) (PyTorch ConvTranspose1d layout).
    bias: unused in the returned tensor (cancels under batch-stat BN).
    Returns (N, C_out, 2*L) f32."""
    del bias  # ConvTranspose bias cancels exactly under training-mode BatchNorm.
    N, Cin, L = x.shape
    Cout = weight.shape[1]

    TL, Lp = _choose_tile(L, Cin, Cout)
    nlt = Lp // TL
    x_in = x if Lp == L else jnp.pad(x, ((0, 0), (0, 0), (0, Lp - L)))

    # Concatenated tap weights: row k*Cout + o  ==  weight[:, o, k].
    w_cat = jnp.transpose(weight, (2, 1, 0)).reshape(2 * Cout, Cin).astype(jnp.float32)

    cp_stats = pltpu.CompilerParams(
        dimension_semantics=("arbitrary", "arbitrary"),
        vmem_limit_bytes=_VMEM_LIMIT)
    cp_main = pltpu.CompilerParams(
        dimension_semantics=("parallel", "parallel"),
        vmem_limit_bytes=_VMEM_LIMIT)

    # ---- pass 1: x-side moments (reads x once; outputs are tiny) ----
    gram, sx = pl.pallas_call(
        _stats_kernel,
        out_shape=(jax.ShapeDtypeStruct((Cin, Cin), jnp.float32),
                   jax.ShapeDtypeStruct((Cin, 1), jnp.float32)),
        grid=(N, nlt),
        in_specs=[pl.BlockSpec((None, Cin, TL), lambda n, j: (n, 0, j))],
        out_specs=(pl.BlockSpec((Cin, Cin), lambda n, j: (0, 0)),
                   pl.BlockSpec((Cin, 1), lambda n, j: (0, 0))),
        compiler_params=cp_stats,
    )(x_in)

    # ---- tiny per-channel BN math (plain JAX, Cout-sized) ----
    cnt = float(N * L)                                  # true count (padding adds zeros)
    mean_x = sx / cnt                                   # (Cin, 1)
    cov_x = gram / cnt - mean_x @ mean_x.T              # (Cin, Cin), centered (better conditioned)
    mu = (w_cat @ mean_x)[:, 0]                         # per-tap per-channel mean (2*Cout,)
    vd = jnp.einsum("rc,cd,rd->r", w_cat, cov_x, w_cat) # per-tap per-channel variance (2*Cout,)
    mu0, mu1 = mu[:Cout], mu[Cout:]
    vd0, vd1 = vd[:Cout], vd[Cout:]
    mean_y = 0.5 * (mu0 + mu1)
    var_y = 0.5 * (vd0 + vd1) + 0.25 * (mu0 - mu1) ** 2  # biased var over both taps
    inv = lax.rsqrt(var_y + EPS)
    scale_c = gamma * inv
    shift_c = beta - mean_y * scale_c
    scale_cat = jnp.concatenate([scale_c, scale_c]).reshape(2 * Cout, 1)
    shift_cat = jnp.concatenate([shift_c, shift_c]).reshape(2 * Cout, 1)

    # ---- pass 2: matmul + folded BN + fused activation, tiled & parallel ----
    y_pad = pl.pallas_call(
        _up_kernel,
        out_shape=jax.ShapeDtypeStruct((N, 2 * Cout, Lp), jnp.float32),
        grid=(N, nlt),
        in_specs=[
            pl.BlockSpec((None, Cin, TL), lambda n, j: (n, 0, j)),
            pl.BlockSpec((2 * Cout, Cin), lambda n, j: (0, 0)),
            pl.BlockSpec((2 * Cout, 1), lambda n, j: (0, 0)),
            pl.BlockSpec((2 * Cout, 1), lambda n, j: (0, 0)),
        ],
        out_specs=pl.BlockSpec((None, 2 * Cout, TL), lambda n, j: (n, 0, j)),
        compiler_params=cp_main,
    )(x_in, w_cat, scale_cat, shift_cat)

    # ---- glue: single fused transpose to interleave the two taps along length ----
    # TODO(synk): this final stride-2 interleave is one XLA transpose over the output;
    # doing it in-kernel would need strided lane stores.
    y_pad = y_pad if Lp == L else y_pad[:, :, :L]
    y = y_pad.reshape(N, 2, Cout, L)                    # [n, k, o, l]
    y = jnp.transpose(y, (0, 2, 3, 1)).reshape(N, Cout, 2 * L)   # [n, o, 2l + k]
    return y


def up_reference(x, weight, bias, gamma, beta):
    """Pure-JAX reference matching PyTorch semantics (training-mode BN)."""
    N, Cin, L = x.shape
    Cout = weight.shape[1]
    yk = jnp.einsum("ncl,cok->nolk", x, weight) + bias[None, :, None, None]
    y = yk.reshape(N, Cout, 2 * L)
    mean = jnp.mean(y, axis=(0, 2), keepdims=True)
    var = jnp.mean((y - mean) ** 2, axis=(0, 2), keepdims=True)
    yh = (y - mean) / jnp.sqrt(var + EPS) * gamma[None, :, None] + beta[None, :, None]
    yh = jnp.where(yh >= 0.0, yh, 0.1 * yh)
    yh = jnp.where(yh >= 0.0, yh, 0.01 * yh)
    return yh


if __name__ == "__main__":
    N, Cin, Cout, L = 2, 8, 4, 16

    key = jax.random.PRNGKey(0)
    kx, kw, kb, kg, kbe = jax.random.split(key, 5)

    x = jax.random.normal(kx, (N, Cin, L), dtype=jnp.float32)
    # nn.ConvTranspose1d weight shape: (in_channels, out_channels, kernel_size)
    weight = 0.2 * jax.random.normal(kw, (Cin, Cout, 2), dtype=jnp.float32)
    bias = 0.1 * jax.random.normal(kb, (Cout,), dtype=jnp.float32)
    gamma = 1.0 + 0.1 * jax.random.normal(kg, (Cout,), dtype=jnp.float32)
    beta = 0.1 * jax.random.normal(kbe, (Cout,), dtype=jnp.float32)

    out = jax.block_until_ready(up_forward(x, weight, bias, gamma, beta))
    ref = up_reference(x, weight, bias, gamma, beta)

    assert out.shape == (N, Cout, 2 * L), out.shape
    assert jnp.allclose(out, ref, rtol=1e-4, atol=1e-4), float(jnp.max(jnp.abs(out - ref)))
    # TODO(synk): BatchNorm1d running_mean/running_var momentum update (training side
    # effect, does not affect the returned tensor) is not reproduced.
    print("KERNEL_OK")
</pallas_src>

<mosaic_0001>
module attributes {stable_mosaic.version = 11 : i64} {
  func.func @_stats_kernel(%arg0: i32, %arg1: i32, %arg2: memref<1x8x16xf32, #tpu.memory_space<vmem>>, %arg3: memref<8x8xf32, #tpu.memory_space<vmem>>, %arg4: memref<8x1xf32, #tpu.memory_space<vmem>>) attributes {dimension_semantics = [#tpu.dimension_semantics<arbitrary>, #tpu.dimension_semantics<arbitrary>], iteration_bounds = array<i64: 2, 1>, scalar_prefetch = 0 : i64, scratch_operands = 0 : i64, tpu.core_type = #tpu.core_type<tc>, window_params = [{transform_indices = @transform_0, window_bounds = array<i64: 1, 8, 16>}, {pipeline_mode = #tpu.pipeline_mode<synchronous>, transform_indices = @transform_1, window_bounds = array<i64: 8, 8>}, {pipeline_mode = #tpu.pipeline_mode<synchronous>, transform_indices = @transform_2, window_bounds = array<i64: 8, 1>}]} {
    %c0_i32 = arith.constant 0 : i32
    %0 = arith.cmpi eq, %arg0, %c0_i32 : i32
    %c0_i32_0 = arith.constant 0 : i32
    %1 = arith.cmpi eq, %arg1, %c0_i32_0 : i32
    %2 = arith.andi %0, %1 : i1
    %3 = arith.extui %2 : i1 to i32
    %c0_i32_1 = arith.constant 0 : i32
    %4 = arith.cmpi ne, %3, %c0_i32_1 : i32
    scf.if %4 {
      %cst_13 = arith.constant 0.000000e+00 : f32
      %16 = vector.broadcast %cst_13 : f32 to vector<8x8xf32>
      %c0_14 = arith.constant 0 : index
      %c0_15 = arith.constant 0 : index
      %17 = vector.load %arg3[%c0_14, %c0_15] : memref<8x8xf32, #tpu.memory_space<vmem>>, vector<8x8xf32>
      tpu.vector_store %arg3[%c0_14, %c0_15], %16 {strides = array<i32>} : memref<8x8xf32, #tpu.memory_space<vmem>>, vector<8x8xf32>,
      %cst_16 = arith.constant 0.000000e+00 : f32
      %18 = vector.broadcast %cst_16 : f32 to vector<8x1xf32>
      %c0_17 = arith.constant 0 : index
      %c0_18 = arith.constant 0 : index
      %19 = vector.load %arg4[%c0_17, %c0_18] : memref<8x1xf32, #tpu.memory_space<vmem>>, vector<8x1xf32>
      tpu.vector_store %arg4[%c0_17, %c0_18], %18 {strides = array<i32>} : memref<8x1xf32, #tpu.memory_space<vmem>>, vector<8x1xf32>,
    } else {
    }
    %c0 = arith.constant 0 : index
    %c0_2 = arith.constant 0 : index
    %c0_3 = arith.constant 0 : index
    %5 = vector.load %arg2[%c0, %c0_2, %c0_3] : memref<1x8x16xf32, #tpu.memory_space<vmem>>, vector<1x8x16xf32>
    %6 = vector.shape_cast %5 : vector<1x8x16xf32> to vector<8x16xf32>
    %c0_4 = arith.constant 0 : index
    %c0_5 = arith.constant 0 : index
    %7 = vector.load %arg3[%c0_4, %c0_5] : memref<8x8xf32, #tpu.memory_space<vmem>>, vector<8x8xf32>
    %cst = arith.constant dense<0.000000e+00> : vector<8x8xf32>
    %8 = tpu.matmul %6, %6, %cst {dimension_numbers = #tpu.dot_dimension_numbers<[1], [1], [0], [0], [0, 0, 1, 0], [], []>} : vector<8x16xf32>, vector<8x16xf32>, vector<8x8xf32> -> vector<8x8xf32>
    %9 = arith.addf %7, %8 : vector<8x8xf32>
    %c0_6 = arith.constant 0 : index
    %c0_7 = arith.constant 0 : index
    %10 = vector.load %arg3[%c0_6, %c0_7] : memref<8x8xf32, #tpu.memory_space<vmem>>, vector<8x8xf32>
    tpu.vector_store %arg3[%c0_6, %c0_7], %9 {strides = array<i32>} : memref<8x8xf32, #tpu.memory_space<vmem>>, vector<8x8xf32>,
    %c0_8 = arith.constant 0 : index
    %c0_9 = arith.constant 0 : index
    %11 = vector.load %arg4[%c0_8, %c0_9] : memref<8x1xf32, #tpu.memory_space<vmem>>, vector<8x1xf32>
    %cst_10 = arith.constant dense<0.000000e+00> : vector<8xf32>
    %12 = vector.multi_reduction <add>, %6, %cst_10 [1] : vector<8x16xf32> to vector<8xf32>
    %13 = vector.shape_cast %12 : vector<8xf32> to vector<8x1xf32>
    %14 = arith.addf %11, %13 : vector<8x1xf32>
    %c0_11 = arith.constant 0 : index
    %c0_12 = arith.constant 0 : index
    %15 = vector.load %arg4[%c0_11, %c0_12] : memref<8x1xf32, #tpu.memory_space<vmem>>, vector<8x1xf32>
    tpu.vector_store %arg4[%c0_11, %c0_12], %14 {strides = array<i32>} : memref<8x1xf32, #tpu.memory_space<vmem>>, vector<8x1xf32>,
    return
  }
  func.func @transform_0(%arg0: i32, %arg1: i32) -> (i32, i32, i32) {
    %c0_i32 = arith.constant 0 : i32
    %c0_i32_0 = arith.constant 0 : i32
    return %arg0, %c0_i32, %arg1 : i32, i32, i32
  }
  func.func @transform_1(%arg0: i32, %arg1: i32) -> (i32, i32) {
    %c0_i32 = arith.constant 0 : i32
    %c0_i32_0 = arith.constant 0 : i32
    %c0_i32_1 = arith.constant 0 : i32
    return %c0_i32, %c0_i32_0 : i32, i32
  }
  func.func @transform_2(%arg0: i32, %arg1: i32) -> (i32, i32) {
    %c0_i32 = arith.constant 0 : i32
    %c0_i32_0 = arith.constant 0 : i32
    %c0_i32_1 = arith.constant 0 : i32
    return %c0_i32, %c0_i32_0 : i32, i32
  }
}

</mosaic_0001>

<bundles_post_ra>
// kernel: tpu_custom_call.1
= control target key start
LH: loop header
LB: loop body
LE: loop exit
PB: predicated region body
PF: predicated region fallthrough
CT: control target
= control target key end

     0   :  { %8 = vsyncpa [#allocation3], 0  ;;  %s708_s0 = inlined_call_operand.hbm [shape: f32[2,8,16], index: 0, kind: input, shape index: {}]   ;;  %s709_s1 = inlined_call_operand.hbm [shape: f32[8,8], index: 1, kind: output, shape index: {0}]   ;;  %s710_s2 = inlined_call_operand.vmem [shape: f32[8,1], index: 2, kind: output, shape index: {1}]  }
   0x1   :  { %10 = vsyncpa [#allocation3 + $0x1], 0 }
   0x2   :  { %11 = vsyncpa [#allocation4], 0  ;;  %s548_s9 = smov 0   ;;  %s550_s10 = smov 0  }
   0x3   :  { %s552_s11 = smov 0   ;;  %s554_s12 = smov 0  }
   0x4   :  { %s556_s13 = smov 0   ;;  %s558_s14 = smov 0  }
   0x5 LB: > { %s329_s15 = sadd.s32 4294967295, %s526_s14   ;;  %s29_s16 = sadd.s32 1, %s522_s13  ;;  %s526_s14 = sphi %s558_s14, %s17_s14   ;;  %s522_s13 = sphi %s556_s13, %s721_s13   ;;  %s518_s12 = sphi %s554_s12, %s720_s12   ;;  %s514_s11 = sphi %s552_s11, %s719_s11   ;;  %s510_s10 = sphi %s550_s10, %s718_s10   ;;  %s506_s9 = sphi %s548_s9, %s717_s9  }
   0x6   : > { %p31_p0 = scmp.ge.s32.totalorder %s29_s16, 2  ;;  %s38_s17 = sadd.s32 1, %s514_s11 }
   0x7   : > { %p45_p1 = scmp.ne.s32.totalorder %s514_s11, %s510_s10  ;;  %p46_p2 = scmp.eq.s32.totalorder %s526_s14, 0 }
   0x8   : > { %s723_s16 = smov (%p31_p0, %s29_s16), 0  ;;  %p51_p4 = scmp.ne.s32.totalorder %s510_s10, %s506_s9 }
   0x9   : > { %p584_p3 = por %p46_p2, %p45_p1  ;;  %s33_s19 = ssub.s32 %s522_s13, %s723_s16 }
   0xa   : > { %p52_p5 = scmp.eq.s32.totalorder %s329_s15, 0  ;;  %p36_p6 = scmp.eq.s32.totalorder %s33_s19, 0 }
   0xb   : > { %p361_p8 = scmp.lt.s32.totalorder %s526_s14, 2  ;;  %s117_s22 = sand.u32 1, %s514_s11  }
   0xc   : > { %p593_p7 = por %p52_p5, %p51_p4  ;;  %s333_s23 = sshll.u32 %s522_s13, 7 }
   0xd   : > { %s599_s21 = scalar_select %p36_p6, %s514_s11, %s38_s17  }
   0xe   : > { %s332_s24 = sshll.u32 %s117_s22, 3  ;;  %s606_s27 = scalar_lea.hbm %s708_s0, %s333_s23 }
   0xf   : > { %s121_s28 = scalar_lea.vmem [#allocation2], %s332_s24  ;;  %p610_p9 = pnand %p361_p8, %p584_p3 }
  0x10   : > { %s129_s29 = sshll.u32 %s121_s28, 4  ;;  %s118_s3 = scalar_lea.sflag [#allocation3], %s117_s22  ;;  %s614_s29 = int_to_ptr.vmem [resolvable:$true] %s129_s29 }
  0x11   : > { %s416_s4 = scalar_lea.hbm %s606_s27, 128  ;;  %p418_p13 = pneg %p610_p9 }
  0x12   : > { %p417_p12 = scmp.ne.s32.totalorder %s606_s27, %s416_s4  ;;  %s421_s7 = scalar_lea.hbm %s708_s0, 256 }
  0x13   : > { %p422_p2 = scmp.lt.u32.totalorder %s606_s27, %s708_s0  ;;  %p423_p3 = scmp.lt.u32.totalorder %s421_s7, %s416_s4 }
  0x14   : > { %p419_p0 = pnand %p418_p13, %p417_p12  ;;  %p425_p5 = scmp.lt.u32.totalorder %s416_s4, %s606_s27 }
  0x15   : > { %p424_p4 = por %p423_p3, %p422_p2 }
  0x16   : > { %p420_p1 = pneg %p419_p0 }
  0x17   : > { %p426_p6 = por %p425_p5, %p424_p4 }
  0x19   : > { %p427_p8 = pnand %p426_p6, %p420_p1 }
  0x1b   : > { %430 = shalt.err (!%p427_p8)
}
  0x1c   : > { %s431_s17 = scalar_lea.vmem %s614_s29, 128  ;;  %s528_s18 = smov [#allocation2]  }
  0x1d   : > { %p432_p12 = scmp.ne.s32.totalorder %s614_s29, %s431_s17  ;;  %s436_s19 = sshll.u32 %s528_s18, 4  ;;  %s437_s19 = int_to_ptr.vmem [resolvable:$false] %s436_s19 }
  0x1e   : > { %s438_s22 = scalar_lea.vmem %s437_s19, 256  ;;  %p439_p11 = scmp.lt.s32.totalorder %s614_s29, %s437_s19 }
  0x1f   : > { %p434_p0 = pnand %p432_p12, %p418_p13  ;;  %p440_p2 = scmp.lt.s32.totalorder %s438_s22, %s431_s17 }
  0x21   : > { %p435_p10 = pneg %p434_p0  ;;  %p441_p3 = por %p440_p2, %p439_p11 }
  0x23   : > { %p442_p4 = pnand %p441_p3, %p435_p10 }
  0x25   : > { %445 = shalt.err (!%p442_p4)
}
  0x26   : > { %360 = dma.hbm_to_vmem [thread:$0]  (!%p610_p9), %s606_s27, 128, %s614_s29, %s118_s3  }
  0x27   : > { %p714_p1 = scmp.lt.s32.totalorder %s526_s14, 3  ;;  %p715_p5 = scmp.ge.s32.totalorder %s526_s14, 1 }
  0x29   : > { %p135_p13 = pnand %p715_p5, %p714_p1 }
  0x2a   : > { %s140_s23 = sand.u32 (!%p135_p13), 1, %s510_s10  }
  0x2b   : > { %138 = sbr.rel (%p135_p13) target bundleno = 294 (0x126), region = 24  ;;  %s335_s24 = sshll.u32 (!%p135_p13), %s140_s23, 3 }
  0x2c   : > { %s141_s25 = scalar_lea.sflag (!%p135_p13), [#allocation3], %s140_s23  ;;  %s144_s26 = scalar_lea.vmem (!%p135_p13), [#allocation2], %s335_s24 }
  0x32   : > { %497 = dma.done.wait (%p593_p7), %s141_s25, 128  }
  0x33   : > { %499 = vsyncadd (%p593_p7), %s141_s25, 4294967168  ;;  %p160_p10 = scmp.eq.s32.totalorder %s518_s12, 0 }
  0x34   : > { %vm166_vm0 = vcmask (%p160_p10), 64512   ;;  %vm168_vm1 = vcmask (%p160_p10), 7168   ;;  %v529_v0 = vmov (%p160_p10), 0.0  }
  0x35   : > { %165 = sbr.rel (!%p160_p10) target bundleno = 60 (0x3c), region = 32  ;;  %167 = vst.msk [vmem:[#allocation5] sm:$0xff] (%p160_p10), %vm166_vm0, %v529_v0 }
  0x36   : > { %169 = vst.msk [vmem:[%s710_s2] sm:$0xff] (%p160_p10), %vm168_vm1, %v529_v0 }
  0x3c PF: > { %v170_v1 = vld [vmem:[%s144_s26] sm:$0xff]  ;;  %vm172_vm2 = vcmask 130048   ;;  %v530_v2 = vmov 0.0   ;;  %vm531_vm3 = vmmov 0   ;;  %vm254_vm4 = vcmask 7168   ;;  %v171_v7 = vld [vmem:[#allocation5] sm:$0xff] }
  0x3d   : > { %346 = vmatprep.subr.mxu0 %v530_v2  ;;  %348 = vmatprep.mubr.msk.f32.mxu0 %vm531_vm3, %v530_v2  ;;  %v250_v3 = vsel %vm172_vm2, %v170_v1, 0.0  ;;  %v249_v4 = vld [vmem:[%s710_s2] sm:$0xff]  ;;  %s532_s3 = smov [#allocation5]   ;;  %vm247_vm5 = vcmask 64512   ;;  %p664_p7 = scmp.eq.s32.totalorder %s329_s15, 1 }
  0x3e   : > { %347 = vmatpush3.xpose.msk.msra.mxu0 %vm172_vm2, %v170_v1  ;;  %251 = vadd.xlane.f32.xlu0 %v250_v3  ;;  %s263_s4 = sshll.u32 %s532_s3, 4  ;;  %s264_s4 = int_to_ptr.vmem [resolvable:$true] %s263_s4 }
  0x3f   : > { %s446_s6 = scalar_lea.vmem %s264_s4, 128  ;;  %p453_p8 = scmp.lt.s32.totalorder %s264_s4, %s264_s4 }
  0x40   : > { %p447_p9 = scmp.ne.s32.totalorder %s264_s4, %s446_s6  ;;  %p454_p12 = scmp.lt.s32.totalorder %s446_s6, %s446_s6 }
  0x41   : > { %349 = vmatmul.mubr.msk.f32.vlgmr.msra.gmra.mrb[0].mxu0 %vm172_vm2, %v170_v1 }
  0x42   : > { %p448_p11 = pnand %p447_p9, %p664_p7  ;;  %p455_p0 = por %p454_p12, %p453_p8 }
  0x44   : > { %p449_p6 = pneg %p448_p11 }
  0x46   : > { %p456_p2 = pnand %p455_p0, %p449_p6 }
  0xcb   : > { %v252_v5 = vpop.xlane.xlu0 %251 }
  0xcc   : > { %v253_v6 = vadd.f32 %v252_v5, %v249_v4 }
  0xce   : > { %255 = vst.msk [vmem:[%s710_s2] sm:$0xff] %vm254_vm4, %v253_v6 }
 0x114   : > { %v242_v8 = vpop.f32.mrb[0].mxu0 }
 0x115   : > { %v246_v9 = vadd.f32 %v242_v8, %v171_v7  ;;  %v350_v10 = vpop.f32.mrb[1].mxu0 }
 0x117   : > { %248 = vst.msk [vmem:[#allocation5] sm:$0xff] %vm247_vm5, %v246_v9 }
 0x118   : > { %459 = shalt.err (!%p456_p2)
}
 0x119   : > { %s460_s8 = scalar_lea.hbm %s709_s1, 128 }
 0x11a   : > { %p461_p3 = scmp.ne.s32.totalorder %s709_s1, %s460_s8  ;;  %p466_p5 = scmp.lt.u32.totalorder %s460_s8, %s709_s1 }
 0x11c   : > { %p462_p4 = pnand %p461_p3, %p664_p7 }
 0x11e   : > { %p463_p1 = pneg %p462_p4 }
 0x120   : > { %p468_p13 = pnand %p466_p5, %p463_p1 }
 0x122   : > { %471 = shalt.err (!%p468_p13)
}
 0x123   : > { %354 = dma.vmem_to_hbm [thread:$0]  (%p664_p7), %s264_s4, 128, %s709_s1, [#allocation4]  }
 0x124   : > { %501 = dma.done.wait (%p664_p7), [#allocation4], 128  }
 0x125   : > { %503 = vsyncadd (%p664_p7), [#allocation4], 4294967168 }
 0x126 PF: > { %s17_s14 = sadd.s32 1, %s526_s14   ;;  %s717_s9 = smov %s510_s10 }
 0x127   : > { %p14_p10 = scmp.ge.s32.totalorder %s17_s14, 4   ;;  %s718_s10 = smov %s514_s11 }
 0x128   : > { %s719_s11 = smov %s599_s21  ;;  %s720_s12 = smov %s522_s13 }
 0x129   : > { %s721_s13 = smov %s723_s16  ;;  %16 = sbr.rel (!%p14_p10) target bundleno = 5 (0x5), region = 73 }
 0x130   :  { %282 = vsyncpa [#allocation3], 1 }
 0x131   :  { %284 = vsyncpa [#allocation3 + $0x1], 1 }
 0x132   :  { %285 = vsyncpa [#allocation4], 1 }
 0x133   :  { %287 = vsyncpa [#allocation4 + $0x1], 1 }

</bundles_post_ra>
